<compile_context>
chip_gen: v7x
topology: tpu7x:2x2x1
jax: 0.10.0
libtpu: 0.0.40
codegen_flags: <defaults>
</compile_context>

<pallas_src>
import jax
import jax.numpy as jnp
from jax.experimental import pallas as pl
from jax.experimental.pallas import tpu as pltpu


def _eltwise_scalars_kernel(x_ref, o_ref):
    # Pure VPU work; upcast narrow dtypes (e.g. bf16 on v5e) to f32 for the
    # arithmetic and cast back on the store. The kernel is HBM-bandwidth bound,
    # so the casts are free filler under the DMA bottleneck.
    x = x_ref[...].astype(jnp.float32)
    o_ref[...] = (-1.5 + 2.5 * x).astype(o_ref.dtype)


_LANE = 128                   # TPU lane width
_SUB = 8                      # f32 sublane count
_ALIGN = _LANE * _SUB         # 1024 elements = one (8, 128) f32 tile
_MAX_BLOCK_BYTES = 2 << 20    # ~2 MiB per block buffer


def _pick_layout(padded_total: int) -> tuple[int, int]:
    """Choose a lane-dense (rows, width) factorization of padded_total."""
    width = _LANE  # always valid: padded_total % (8*128) == 0
    for w in (8192, 4096, 2048, 1024, 512, 256, 128):
        if padded_total % w == 0 and (padded_total // w) % _SUB == 0:
            width = w
            break
    return padded_total // width, width


def _pick_block_rows(rows: int, bytes_per_row: int) -> int:
    """Block row count: a multiple of 8 exactly dividing rows (or rows itself)."""
    total_bytes = rows * bytes_per_row
    if total_bytes <= _MAX_BLOCK_BYTES:
        # Whole slab fits one step. Split in two when cheap so v7x's second
        # TensorCore can also stream on non-trivial sizes.
        if rows % (2 * _SUB) == 0 and total_bytes >= (1 << 20):
            return rows // 2
        return rows
    cap = max(_SUB, (_MAX_BLOCK_BYTES // bytes_per_row) // _SUB * _SUB)
    block_rows = _SUB
    for d in range(_SUB, min(rows, cap) + 1, _SUB):
        if rows % d == 0:
            block_rows = d
    return block_rows


def eltwise_scalars(x: jax.Array) -> jax.Array:
    """Computes -1.5 + 2.5 * x with a Pallas TPU kernel."""
    orig_shape = x.shape
    in_dtype = x.dtype
    # Match PyTorch type promotion: float dtypes stay, integer dtypes -> f32.
    out_dtype = in_dtype if jnp.issubdtype(in_dtype, jnp.floating) else jnp.float32

    total = x.size
    x_flat = x.reshape(-1)  # contiguous reshape: free

    # Pad only when the element count is ragged w.r.t. one (8,128) tile.
    padded_total = pl.cdiv(total, _ALIGN) * _ALIGN
    if padded_total != total:
        x_flat = jnp.pad(x_flat, (0, padded_total - total))

    rows, width = _pick_layout(padded_total)
    x2d = x_flat.reshape(rows, width)

    bytes_per_row = width * max(jnp.dtype(in_dtype).itemsize,
                                jnp.dtype(out_dtype).itemsize)
    block_rows = _pick_block_rows(rows, bytes_per_row)
    grid = (rows // block_rows,)  # exact division by construction: no tail drop

    out2d = pl.pallas_call(
        _eltwise_scalars_kernel,
        out_shape=jax.ShapeDtypeStruct((rows, width), out_dtype),
        grid_spec=pltpu.PrefetchScalarGridSpec(
            num_scalar_prefetch=0,
            grid=grid,
            in_specs=[pl.BlockSpec((block_rows, width), lambda i: (i, 0))],
            out_specs=pl.BlockSpec((block_rows, width), lambda i: (i, 0)),
        ),
        compiler_params=pltpu.CompilerParams(
            dimension_semantics=("parallel",),
        ),
    )(x2d)

    if padded_total != total:
        return out2d.reshape(-1)[:total].reshape(orig_shape)
    return out2d.reshape(orig_shape)


if __name__ == "__main__":
    key = jax.random.PRNGKey(0)
    # Small NCHW input consistent with the module's elementwise forward.
    x = jax.random.normal(key, (2, 4, 16, 16), dtype=jnp.float32)

    fn = jax.jit(eltwise_scalars)
    y = fn(x)
    jax.block_until_ready(y)

    # Reference check against plain JAX.
    y_ref = -1.5 + 2.5 * x
    assert y.shape == x.shape and y.dtype == x.dtype
    assert jnp.allclose(y, y_ref, atol=1e-6, rtol=1e-6)

    print("KERNEL_OK")
</pallas_src>

<mosaic_0001>
module attributes {stable_mosaic.version = 11 : i64} {
  func.func @_eltwise_scalars_kernel(%arg0: i32, %arg1: memref<8x256xf32, #tpu.memory_space<vmem>>, %arg2: memref<8x256xf32, #tpu.memory_space<vmem>>) attributes {dimension_semantics = [#tpu.dimension_semantics<parallel>], iteration_bounds = array<i64: 1>, scalar_prefetch = 0 : i64, scratch_operands = 0 : i64, tpu.core_type = #tpu.core_type<tc>, window_params = [{transform_indices = @transform_0, window_bounds = array<i64: 8, 256>}, {transform_indices = @transform_1, window_bounds = array<i64: 8, 256>}]} {
    %c0 = arith.constant 0 : index
    %c0_0 = arith.constant 0 : index
    %0 = vector.load %arg1[%c0, %c0_0] : memref<8x256xf32, #tpu.memory_space<vmem>>, vector<8x256xf32>
    %cst = arith.constant 2.500000e+00 : f32
    %1 = vector.broadcast %cst : f32 to vector<8x256xf32>
    %2 = arith.mulf %1, %0 : vector<8x256xf32>
    %cst_1 = arith.constant -1.500000e+00 : f32
    %3 = vector.broadcast %cst_1 : f32 to vector<8x256xf32>
    %4 = arith.addf %3, %2 : vector<8x256xf32>
    %c0_2 = arith.constant 0 : index
    %c0_3 = arith.constant 0 : index
    %5 = vector.load %arg2[%c0_2, %c0_3] : memref<8x256xf32, #tpu.memory_space<vmem>>, vector<8x256xf32>
    tpu.vector_store %arg2[%c0_2, %c0_3], %4 {strides = array<i32>} : memref<8x256xf32, #tpu.memory_space<vmem>>, vector<8x256xf32>,
    return
  }
  func.func @transform_0(%arg0: i32) -> (i32, i32) {
    %c0_i32 = arith.constant 0 : i32
    %c0_i32_0 = arith.constant 0 : i32
    return %arg0, %c0_i32 : i32, i32
  }
  func.func @transform_1(%arg0: i32) -> (i32, i32) {
    %c0_i32 = arith.constant 0 : i32
    %c0_i32_0 = arith.constant 0 : i32
    return %arg0, %c0_i32 : i32, i32
  }
}

</mosaic_0001>

<bundles_post_ra>
// kernel: eltwise_scalars.1
= control target key start
LH: loop header
LB: loop body
LE: loop exit
PB: predicated region body
PF: predicated region fallthrough
CT: control target
= control target key end

     0   :  { %s42_s0 = inlined_call_operand.vmem [shape: f32[8,256], index: 0, kind: input, shape index: {}]   ;;  %s43_s1 = inlined_call_operand.vmem [shape: f32[8,256], index: 1, kind: output, shape index: {}]  }
   0x1   :  { %v8_v0 = vld [vmem:[%s42_s0] sm:$0xff]  ;;  %v9_v1 = vld [vmem:[%s42_s0 + $0x8] sm:$0xff] }
   0x2   :  { %v10_v2 = vmul.f32 2.5, %v8_v0  ;;  %v11_v3 = vmul.f32 2.5, %v9_v1 }
   0x4   :  { %v12_v4 = vadd.f32 -1.5, %v10_v2  ;;  %v13_v5 = vadd.f32 -1.5, %v11_v3 }
   0x6   :  { %14 = vst [vmem:[%s43_s1] sm:$0xff] %v12_v4  ;;  %15 = vst [vmem:[%s43_s1 + $0x8] sm:$0xff] %v13_v5 }

</bundles_post_ra>
